<compile_context>
chip_gen: v6e
topology: v6e:2x2x1
jax: 0.10.0
libtpu: 0.0.40
codegen_flags: <defaults>
</compile_context>

<pallas_src>
import functools

import jax
import jax.numpy as jnp
from jax.experimental import pallas as pl
from jax.experimental.pallas import tpu as pltpu


def _mlp_kernel(x_ref, w_ref, b_ref, o_ref, acc_ref):
    # x_ref: (tm, tk) activations tile
    # w_ref: (tn, tk) weight tile in PyTorch (n_out, n_in) layout
    # b_ref: (1, tn) bias tile
    # o_ref: (tm, tn) output tile (resident across the K axis)
    # acc_ref: (tm, tn) f32 VMEM accumulator scratch

    @pl.when(pl.program_id(2) == 0)
    def _():
        acc_ref[...] = jnp.zeros_like(acc_ref)

    # x @ W^T without materializing a transpose: contract x dim 1 with W dim 1.
    acc_ref[...] += jax.lax.dot_general(
        x_ref[...], w_ref[...],
        dimension_numbers=(((1,), (1,)), ((), ())),
        preferred_element_type=jnp.float32,
    )

    @pl.when(pl.program_id(2) == pl.num_programs(2) - 1)
    def _():
        y = acc_ref[...] + b_ref[...].astype(jnp.float32)
        # Exact (erf-based) GELU, matching torch.nn.GELU() default.
        g = 0.5 * y * (1.0 + jax.lax.erf(y * jnp.float32(0.7071067811865476)))
        o_ref[...] = g.astype(o_ref.dtype)


def _round_up(v, m):
    return (v + m - 1) // m * m


@functools.partial(jax.jit, static_argnames=("tm", "tn", "tk", "compute_dtype"))
def mlp_forward(x, weight, bias, *, tm=256, tn=256, tk=512, compute_dtype=None):
    """x: (B, n_in); weight: (n_out, n_in) PyTorch layout; bias: (n_out,)."""
    M, K = x.shape
    N, K2 = weight.shape
    assert K == K2 and bias.shape == (N,)
    out_dtype = x.dtype

    # Clamp tiles to the (8,128)-padded problem so tiny problems are one block
    # and large problems get MXU-friendly 256-ish tiles (128-granule on v5e).
    tm = min(tm, _round_up(M, 8))
    tn = min(tn, _round_up(N, 128))
    tk = min(tk, _round_up(K, 128))
    Mp, Np, Kp = _round_up(M, tm), _round_up(N, tn), _round_up(K, tk)

    if compute_dtype is not None:
        x = x.astype(compute_dtype)
        weight = weight.astype(compute_dtype)

    xp = jnp.pad(x, ((0, Mp - M), (0, Kp - K))) if (Mp, Kp) != (M, K) else x
    wp = jnp.pad(weight, ((0, Np - N), (0, Kp - K))) if (Np, Kp) != (N, K) else weight
    bp = (jnp.pad(bias, (0, Np - N)) if Np != N else bias).reshape(1, Np)

    grid = (Mp // tm, Np // tn, Kp // tk)

    out = pl.pallas_call(
        _mlp_kernel,
        out_shape=jax.ShapeDtypeStruct((Mp, Np), out_dtype),
        grid_spec=pltpu.PrefetchScalarGridSpec(
            num_scalar_prefetch=0,
            grid=grid,
            in_specs=[
                pl.BlockSpec((tm, tk), lambda i, j, k: (i, k)),   # x
                pl.BlockSpec((tn, tk), lambda i, j, k: (j, k)),   # W (n_out, n_in)
                pl.BlockSpec((1, tn), lambda i, j, k: (0, j)),    # bias
            ],
            out_specs=pl.BlockSpec((tm, tn), lambda i, j, k: (i, j)),
            scratch_shapes=[pltpu.VMEM((tm, tn), jnp.float32)],
        ),
        compiler_params=pltpu.CompilerParams(
            # M/N parallel -> v7x megacore sharding; K is the reduction axis.
            dimension_semantics=("parallel", "parallel", "arbitrary"),
            # Safe on every generation (v5e default scoped VMEM is only 16 MiB,
            # v7x physical is 64 MiB); tiles above use < 4 MiB double-buffered.
            vmem_limit_bytes=32 * 1024 * 1024,
        ),
    )(xp, wp, bp)

    if (Mp, Np) != (M, N):
        out = out[:M, :N]
    return out


if __name__ == "__main__":
    # Small shapes implied by the module: batch=8, n_in=32, n_out=32.
    # (At these sizes the kernel is launch/DMA overhead; the tiling pays off at
    #  production B / n_in / n_out.)
    B, n_in, n_out = 8, 32, 32
    key = jax.random.PRNGKey(0)
    kx, kw, kb = jax.random.split(key, 3)

    x = jax.random.normal(kx, (B, n_in), dtype=jnp.float32)
    bound = 1.0 / (n_in ** 0.5)
    weight = jax.random.uniform(kw, (n_out, n_in), minval=-bound, maxval=bound,
                                dtype=jnp.float32)
    bias = jax.random.uniform(kb, (n_out,), minval=-bound, maxval=bound,
                              dtype=jnp.float32)

    out = mlp_forward(x, weight, bias)
    jax.block_until_ready(out)

    # Pure-JAX reference of the same math (dropout p=0 is identity).
    ref = x @ weight.T + bias
    ref = 0.5 * ref * (1.0 + jax.lax.erf(ref / jnp.sqrt(2.0)))
    assert out.shape == (B, n_out)
    assert jnp.allclose(out, ref, atol=1e-5, rtol=1e-5)

    print("KERNEL_OK")
</pallas_src>

<mosaic_0001>
module attributes {stable_mosaic.version = 11 : i64} {
  func.func @_mlp_kernel(%arg0: i32, %arg1: i32, %arg2: i32, %arg3: memref<8x128xf32, #tpu.memory_space<vmem>>, %arg4: memref<128x128xf32, #tpu.memory_space<vmem>>, %arg5: memref<1x128xf32, #tpu.memory_space<vmem>>, %arg6: memref<8x128xf32, #tpu.memory_space<vmem>>, %arg7: memref<8x128xf32, #tpu.memory_space<vmem>>) attributes {dimension_semantics = [#tpu.dimension_semantics<parallel>, #tpu.dimension_semantics<parallel>, #tpu.dimension_semantics<arbitrary>], iteration_bounds = array<i64: 1, 1, 1>, scalar_prefetch = 0 : i64, scratch_operands = 1 : i64, tpu.core_type = #tpu.core_type<tc>, window_params = [{transform_indices = @transform_0, window_bounds = array<i64: 8, 128>}, {transform_indices = @transform_1, window_bounds = array<i64: 128, 128>}, {transform_indices = @transform_2, window_bounds = array<i64: 1, 128>}, {transform_indices = @transform_3, window_bounds = array<i64: 8, 128>}]} {
    %c0_i32 = arith.constant 0 : i32
    %0 = arith.cmpi eq, %arg2, %c0_i32 : i32
    %1 = arith.extui %0 : i1 to i32
    %c0_i32_0 = arith.constant 0 : i32
    %2 = arith.cmpi ne, %1, %c0_i32_0 : i32
    scf.if %2 {
      %cst_10 = arith.constant 0.000000e+00 : f32
      %12 = vector.broadcast %cst_10 : f32 to vector<8x128xf32>
      %c0_11 = arith.constant 0 : index
      %c0_12 = arith.constant 0 : index
      %13 = vector.load %arg7[%c0_11, %c0_12] : memref<8x128xf32, #tpu.memory_space<vmem>>, vector<8x128xf32>
      tpu.vector_store %arg7[%c0_11, %c0_12], %12 {strides = array<i32>} : memref<8x128xf32, #tpu.memory_space<vmem>>, vector<8x128xf32>,
    } else {
    }
    %c0 = arith.constant 0 : index
    %c0_1 = arith.constant 0 : index
    %3 = vector.load %arg7[%c0, %c0_1] : memref<8x128xf32, #tpu.memory_space<vmem>>, vector<8x128xf32>
    %c0_2 = arith.constant 0 : index
    %c0_3 = arith.constant 0 : index
    %4 = vector.load %arg3[%c0_2, %c0_3] : memref<8x128xf32, #tpu.memory_space<vmem>>, vector<8x128xf32>
    %c0_4 = arith.constant 0 : index
    %c0_5 = arith.constant 0 : index
    %5 = vector.load %arg4[%c0_4, %c0_5] : memref<128x128xf32, #tpu.memory_space<vmem>>, vector<128x128xf32>
    %cst = arith.constant dense<0.000000e+00> : vector<8x128xf32>
    %6 = tpu.matmul %4, %5, %cst {dimension_numbers = #tpu.dot_dimension_numbers<[1], [1], [0], [0], [0, 0, 1, 0], [], []>} : vector<8x128xf32>, vector<128x128xf32>, vector<8x128xf32> -> vector<8x128xf32>
    %7 = arith.addf %3, %6 : vector<8x128xf32>
    %c0_6 = arith.constant 0 : index
    %c0_7 = arith.constant 0 : index
    %8 = vector.load %arg7[%c0_6, %c0_7] : memref<8x128xf32, #tpu.memory_space<vmem>>, vector<8x128xf32>
    tpu.vector_store %arg7[%c0_6, %c0_7], %7 {strides = array<i32>} : memref<8x128xf32, #tpu.memory_space<vmem>>, vector<8x128xf32>,
    %c0_i32_8 = arith.constant 0 : i32
    %9 = arith.cmpi eq, %arg2, %c0_i32_8 : i32
    %10 = arith.extui %9 : i1 to i32
    %c0_i32_9 = arith.constant 0 : i32
    %11 = arith.cmpi ne, %10, %c0_i32_9 : i32
    scf.if %11 {
      %c0_10 = arith.constant 0 : index
      %c0_11 = arith.constant 0 : index
      %12 = vector.load %arg7[%c0_10, %c0_11] : memref<8x128xf32, #tpu.memory_space<vmem>>, vector<8x128xf32>
      %c0_12 = arith.constant 0 : index
      %c0_13 = arith.constant 0 : index
      %13 = vector.load %arg5[%c0_12, %c0_13] : memref<1x128xf32, #tpu.memory_space<vmem>>, vector<1x128xf32>
      %14 = vector.broadcast %13 : vector<1x128xf32> to vector<8x128xf32>
      %15 = arith.addf %12, %14 : vector<8x128xf32>
      %cst_14 = arith.constant 5.000000e-01 : f32
      %16 = vector.broadcast %cst_14 : f32 to vector<8x128xf32>
      %17 = arith.mulf %16, %15 : vector<8x128xf32>
      %cst_15 = arith.constant 0.707106769 : f32
      %18 = vector.broadcast %cst_15 : f32 to vector<8x128xf32>
      %19 = arith.mulf %15, %18 : vector<8x128xf32>
      %20 = math.erf %19 : vector<8x128xf32>
      %cst_16 = arith.constant 1.000000e+00 : f32
      %21 = vector.broadcast %cst_16 : f32 to vector<8x128xf32>
      %22 = arith.addf %21, %20 : vector<8x128xf32>
      %23 = arith.mulf %17, %22 : vector<8x128xf32>
      %c0_17 = arith.constant 0 : index
      %c0_18 = arith.constant 0 : index
      %24 = vector.load %arg6[%c0_17, %c0_18] : memref<8x128xf32, #tpu.memory_space<vmem>>, vector<8x128xf32>
      tpu.vector_store %arg6[%c0_17, %c0_18], %23 {strides = array<i32>} : memref<8x128xf32, #tpu.memory_space<vmem>>, vector<8x128xf32>,
    } else {
    }
    return
  }
  func.func @transform_0(%arg0: i32, %arg1: i32, %arg2: i32) -> (i32, i32) {
    %c0_i32 = arith.constant 0 : i32
    return %arg0, %arg2 : i32, i32
  }
  func.func @transform_1(%arg0: i32, %arg1: i32, %arg2: i32) -> (i32, i32) {
    %c0_i32 = arith.constant 0 : i32
    return %arg1, %arg2 : i32, i32
  }
  func.func @transform_2(%arg0: i32, %arg1: i32, %arg2: i32) -> (i32, i32) {
    %c0_i32 = arith.constant 0 : i32
    %c0_i32_0 = arith.constant 0 : i32
    return %c0_i32, %arg1 : i32, i32
  }
  func.func @transform_3(%arg0: i32, %arg1: i32, %arg2: i32) -> (i32, i32) {
    %c0_i32 = arith.constant 0 : i32
    return %arg0, %arg1 : i32, i32
  }
}

</mosaic_0001>

<bundles_post_ra>
// kernel: mlp_forward.1
= control target key start
LH: loop header
LB: loop body
LE: loop exit
PB: predicated region body
PF: predicated region fallthrough
CT: control target
= control target key end

     0   :  { %v222_v1 = vmov 0.0   ;;  %vm223_vm0 = vmmov 0   ;;  %s302_s0 = inlined_call_operand.vmem [shape: f32[8,128], index: 0, kind: input, shape index: {}]   ;;  %s303_s1 = inlined_call_operand.vmem [shape: f32[128,128], index: 1, kind: input, shape index: {}]   ;;  %s304_s2 = inlined_call_operand.vmem [shape: f32[1,128], index: 2, kind: input, shape index: {}]   ;;  %s305_s3 = inlined_call_operand.hbm [shape: f32[8,128], index: 3, kind: output, shape index: {}]  }
   0x1   :  { %v37_v0 = vld [vmem:[%s303_s1 + $0x78] sm:$0xff]  ;;  %160 = vmatprep.subr.mxu0 %v222_v1  ;;  %192 = vmatprep.mubr.msk.f32.mxu0 %vm223_vm0, %v222_v1  ;;  %v36_v2 = vld [vmem:[%s303_s1 + $0x70] sm:$0xff] }
   0x2   :  { %161 = vmatpush3.xpose.msra.mxu0 %v37_v0 }
   0x3   :  { %162 = vmatprep.subr.mxu0 %v222_v1 }
   0x4   :  { %8 = vsyncpa [#allocation4], 0  ;;  %v35_v3 = vld [vmem:[%s303_s1 + $0x68] sm:$0xff]  ;;  %v34_v4 = vld [vmem:[%s303_s1 + $0x60] sm:$0xff]  ;;  %s224_s21 = smov [#allocation3]  }
   0x5   :  { %v33_v5 = vld [vmem:[%s303_s1 + $0x58] sm:$0xff]  ;;  %v32_v6 = vld [vmem:[%s303_s1 + $0x50] sm:$0xff]  ;;  %v31_v7 = vld [vmem:[%s303_s1 + $0x48] sm:$0xff]  ;;  %s134_s22 = sshll.u32 %s224_s21, 4  ;;  %s135_s22 = int_to_ptr.vmem [resolvable:$true] %s134_s22 }
   0x6   :  { %163 = vmatpush3.xpose.msra.mxu0 %v36_v2  ;;  %v30_v8 = vld [vmem:[%s303_s1 + $0x40] sm:$0xff]  ;;  %v29_v9 = vld [vmem:[%s303_s1 + $0x38] sm:$0xff]  ;;  %v28_v10 = vld [vmem:[%s303_s1 + $0x30] sm:$0xff]  ;;  %p205_p1 = scmp.lt.s32.totalorder %s135_s22, %s135_s22 }
   0x7   :  { %164 = vmatprep.subr.mxu0 %v222_v1  ;;  %v27_v11 = vld [vmem:[%s303_s1 + $0x28] sm:$0xff]  ;;  %v26_v12 = vld [vmem:[%s303_s1 + $0x20] sm:$0xff]  ;;  %v25_v13 = vld [vmem:[%s303_s1 + $0x18] sm:$0xff] }
   0x8   :  { %v24_v14 = vld [vmem:[%s303_s1 + $0x10] sm:$0xff]  ;;  %v23_v15 = vld [vmem:[%s303_s1 + $0x8] sm:$0xff]  ;;  %v22_v16 = vld [vmem:[%s303_s1] sm:$0xff]  ;;  %s200_s1 = scalar_lea.vmem %s135_s22, 128 }
   0x9   :  { %v21_v17 = vld [vmem:[%s302_s0] sm:$0xff]  ;;  %p201_p0 = scmp.ne.s32.totalorder %s135_s22, %s200_s1  ;;  %p206_p2 = scmp.lt.s32.totalorder %s200_s1, %s200_s1 }
   0xa   :  { %165 = vmatpush3.xpose.msra.mxu0 %v35_v3  ;;  %v142_v18 = vld [vmem:[%s304_s2] ss:$0 sm:$0xff] }
   0xb   :  { %166 = vmatprep.subr.mxu0 %v222_v1  ;;  %p207_p3 = por %p206_p2, %p205_p1 }
   0xd   :  { %p208_p4 = pnand %p207_p3, %p201_p0 }
   0xe   :  { %167 = vmatpush3.xpose.msra.mxu0 %v34_v4 }
   0xf   :  { %168 = vmatprep.subr.mxu0 %v222_v1 }
  0x12   :  { %169 = vmatpush3.xpose.msra.mxu0 %v33_v5 }
  0x13   :  { %170 = vmatprep.subr.mxu0 %v222_v1 }
  0x16   :  { %171 = vmatpush3.xpose.msra.mxu0 %v32_v6 }
  0x17   :  { %172 = vmatprep.subr.mxu0 %v222_v1 }
  0x1a   :  { %173 = vmatpush3.xpose.msra.mxu0 %v31_v7 }
  0x1b   :  { %174 = vmatprep.subr.mxu0 %v222_v1 }
  0x1e   :  { %175 = vmatpush3.xpose.msra.mxu0 %v30_v8 }
  0x1f   :  { %176 = vmatprep.subr.mxu0 %v222_v1 }
  0x22   :  { %177 = vmatpush3.xpose.msra.mxu0 %v29_v9 }
  0x23   :  { %178 = vmatprep.subr.mxu0 %v222_v1 }
  0x26   :  { %179 = vmatpush3.xpose.msra.mxu0 %v28_v10 }
  0x27   :  { %180 = vmatprep.subr.mxu0 %v222_v1 }
  0x2a   :  { %181 = vmatpush3.xpose.msra.mxu0 %v27_v11 }
  0x2b   :  { %182 = vmatprep.subr.mxu0 %v222_v1 }
  0x2e   :  { %183 = vmatpush3.xpose.msra.mxu0 %v26_v12 }
  0x2f   :  { %184 = vmatprep.subr.mxu0 %v222_v1 }
  0x32   :  { %185 = vmatpush3.xpose.msra.mxu0 %v25_v13 }
  0x33   :  { %186 = vmatprep.subr.mxu0 %v222_v1 }
  0x36   :  { %187 = vmatpush3.xpose.msra.mxu0 %v24_v14 }
  0x37   :  { %188 = vmatprep.subr.mxu0 %v222_v1 }
  0x3a   :  { %189 = vmatpush3.xpose.msra.mxu0 %v23_v15 }
  0x3b   :  { %190 = vmatprep.subr.mxu0 %v222_v1 }
  0x3e   :  { %191 = vmatpush3.xpose.msra.mxu0 %v22_v16 }
  0x41   :  { %193 = vmatmul.mubr.f32.vlgmr.msra.gmra.mxu0 %v21_v17 }
 0x101   :  { %v104_v19 = vpop.f32.mrf.mxu0 }
 0x102   :  { %v121_v20 = vadd.f32 %v142_v18, %v104_v19 }
 0x103   :  { %v194_v21 = vpop.f32.mrf.mxu0 }
 0x104   :  { %v123_v22 = vmul.f32 0.70710677, %v121_v20  ;;  %v122_v24 = vmul.f32 0.5, %v121_v20 }
 0x106   :  { %198 = verf.f32 %v123_v22 }
 0x113   :  { %v199_v23 = vpop.eup %198 }
 0x114   :  { %v125_v25 = vadd.f32 1.0, %v199_v23 }
 0x116   :  { %v126_v26 = vmul.f32 %v125_v25, %v122_v24 }
 0x118   :  { %127 = vst [vmem:[#allocation3] sm:$0xff] %v126_v26 }
 0x119   :  { %211 = shalt.err (!%p208_p4)
}
 0x11a   :  { %137 = dma.vmem_to_hbm [thread:$0]  %s135_s22, 128, %s305_s3, [#allocation4]  }
 0x11b   :  { %220 = dma.done.wait [#allocation4], 128  }
 0x11c   :  { %221 = vsyncadd [#allocation4], 4294967168 }
 0x11d   :  { %141 = vsyncpa [#allocation4], 1 }

</bundles_post_ra>
